<compile_context>
chip_gen: v7x
topology: tpu7x:2x2x1
jax: 0.10.0
libtpu: 0.0.40
codegen_flags: <defaults>
</compile_context>

<pallas_src>
import functools
import math

import jax
import jax.numpy as jnp
from jax.experimental import pallas as pl
from jax.experimental.pallas import tpu as pltpu


# -----------------------------------------------------------------------------
# Kernel: one block-diagonal matmul per layer, f32 accumulation.
# -----------------------------------------------------------------------------
def _group_mlp_kernel(x_ref, w1_ref, b1_ref, w2_ref, b2_ref, o_ref, *, compute_dtype):
    # x_ref : (B_tile, G*in_dim)   compute_dtype
    # w1_ref: (G*in_dim, G*rank)   compute_dtype (block-diagonal)
    # b1_ref: (1, G*rank)          f32
    # w2_ref: (G*rank, G*out_dim)  compute_dtype (block-diagonal)
    # b2_ref: (1, G*out_dim)       f32
    # o_ref : (B_tile, G*out_dim)  output dtype
    h = jnp.dot(x_ref[...], w1_ref[...], preferred_element_type=jnp.float32)
    h = jnp.maximum(h + b1_ref[...], 0.0)                    # f32 bias-add / ReLU
    y = jnp.dot(h.astype(compute_dtype), w2_ref[...],
                preferred_element_type=jnp.float32)
    o_ref[...] = (y + b2_ref[...]).astype(o_ref.dtype)


# -----------------------------------------------------------------------------
# Block-diagonal weight packing (one-time XLA prologue, no kernel cost).
# -----------------------------------------------------------------------------
def _block_diag(w, G):
    """w: (num, din, dout) -> (num//G, G*din, G*dout) with per-group diagonal blocks."""
    num, din, dout = w.shape
    ng = num // G
    w = w.reshape(ng, G, din, dout)
    eye = jnp.eye(G, dtype=w.dtype)
    bd = jnp.einsum("gh,tgio->tgiho", eye, w)
    return bd.reshape(ng, G * din, G * dout)


# -----------------------------------------------------------------------------
# Tile selection: VMEM-budgeted, (8,128)-rule safe, generation-aware budget.
# -----------------------------------------------------------------------------
def _choose_tiles(B_pad, num, in_dim, rank, out_dim, itemsize, budget, sub):
    # Group-tile candidates: divisors of num whose packed x / out slabs are
    # 128-lane aligned; otherwise fall back to G = num (block == full array dims
    # -> exempt from the (8,128) BlockSpec rule; no unrolled loop anymore, so
    # G = num only costs VMEM, which the budget check below still bounds).
    g_all = [g for g in range(1, num + 1) if num % g == 0]
    g_valid = [g for g in g_all
               if (g * in_dim) % 128 == 0 and (g * out_dim) % 128 == 0]
    if not g_valid:
        g_valid = [num]

    # Batch-tile candidates: sublane-quantum multiples dividing the padded batch.
    b_valid = [t for t in range(sub, min(B_pad, 4096) + 1, sub) if B_pad % t == 0]
    if not b_valid:
        b_valid = [B_pad]

    def working_set(bt, g):
        acts = (bt * g * in_dim + bt * g * out_dim) * itemsize
        wts = (g * g * in_dim * rank + g * g * rank * out_dim) * itemsize  # bd slabs
        biases = (g * rank + g * out_dim) * 4
        return 2 * (acts + wts + biases)                    # double-buffered

    best, best_score = (b_valid[0], g_valid[0]), -1
    for g in g_valid:
        for bt in b_valid:
            if working_set(bt, g) <= budget:
                score = bt * g
                if score > best_score or (score == best_score and bt > best[0]):
                    best, best_score = (bt, g), score
    B_tile, G = best

    # Megacore (v7x): if the grid would be (1, 1), split the batch axis so both
    # TensorCores get work (costs one ~0.35us grid step on single-TC chips).
    if num // G == 1 and B_pad // B_tile == 1:
        smaller = [t for t in b_valid if t < B_tile]
        if smaller:
            B_tile = max(smaller)
    return B_tile, G


# -----------------------------------------------------------------------------
# Wrapper
# -----------------------------------------------------------------------------
def group_mlp(x, w1, b1, w2, b2, *, compute_dtype=jnp.bfloat16):
    """x: (B, num, in_dim); w1: (num, in_dim, rank); b1: (num, rank);
    w2: (num, rank, out_dim); b2: (num, out_dim) -> (B, num, out_dim)."""
    B, num, in_dim = x.shape
    rank = w1.shape[-1]
    out_dim = w2.shape[-1]
    out_dtype = x.dtype
    cdt = jnp.dtype(compute_dtype)

    # Sublane quantum for the storage dtype; pad batch up to it (never let the
    # batch tile silently bypass the VMEM budget).
    sub = 8 if cdt.itemsize >= 4 else (16 if cdt.itemsize == 2 else 32)
    B_pad = ((B + sub - 1) // sub) * sub

    # Generation-aware VMEM budget (v5e/v6e: 128 MiB, v7x: 64 MiB per TC).
    try:
        info = pltpu.get_tpu_info()
        vmem_bytes = int(getattr(info, "vmem_capacity_bytes", 64 << 20))
    except Exception:
        vmem_bytes = 64 << 20                      # conservative fallback
    budget = max(8 << 20, min(48 << 20, vmem_bytes // 3))
    vmem_limit = int(min(vmem_bytes * 3 // 4, 96 << 20))

    B_tile, G = _choose_tiles(B_pad, num, in_dim, rank, out_dim,
                              cdt.itemsize, budget, sub)
    ng, nb = num // G, B_pad // B_tile

    # Free reshapes + one-time packing (XLA prologue; no HBM transposes).
    x2 = x.reshape(B, num * in_dim).astype(cdt)
    if B_pad != B:
        x2 = jnp.pad(x2, ((0, B_pad - B), (0, 0)))
    w1_bd = _block_diag(w1.astype(cdt), G)                   # (ng, G*in_dim, G*rank)
    w2_bd = _block_diag(w2.astype(cdt), G)                   # (ng, G*rank, G*out_dim)
    b1_p = b1.astype(jnp.float32).reshape(ng, 1, G * rank)
    b2_p = b2.astype(jnp.float32).reshape(ng, 1, G * out_dim)

    kernel = functools.partial(_group_mlp_kernel, compute_dtype=cdt)

    out2 = pl.pallas_call(
        kernel,
        out_shape=jax.ShapeDtypeStruct((B_pad, num * out_dim), out_dtype),
        grid=(ng, nb),  # batch innermost -> weight slabs stay resident across it
        in_specs=[
            pl.BlockSpec((B_tile, G * in_dim), lambda g, b: (b, g)),
            pl.BlockSpec((None, G * in_dim, G * rank), lambda g, b: (g, 0, 0)),
            pl.BlockSpec((None, 1, G * rank), lambda g, b: (g, 0, 0)),
            pl.BlockSpec((None, G * rank, G * out_dim), lambda g, b: (g, 0, 0)),
            pl.BlockSpec((None, 1, G * out_dim), lambda g, b: (g, 0, 0)),
        ],
        out_specs=pl.BlockSpec((B_tile, G * out_dim), lambda g, b: (b, g)),
        compiler_params=pltpu.CompilerParams(
            dimension_semantics=("parallel", "parallel"),
            vmem_limit_bytes=vmem_limit,
        ),
    )(x2, w1_bd, b1_p, w2_bd, b2_p)

    if B_pad != B:
        out2 = out2[:B]
    return out2.reshape(B, num, out_dim)


# -----------------------------------------------------------------------------
# Reference + test
# -----------------------------------------------------------------------------
def group_mlp_ref(x, w1, b1, w2, b2):
    # Pure-JAX reference mirroring the PyTorch forward (full-precision matmuls).
    h = jnp.einsum("bnd,ndr->bnr", x, w1, precision="highest") + b1[None]
    h = jnp.maximum(h, 0.0)
    return jnp.einsum("bnr,nro->bno", h, w2, precision="highest") + b2[None]


def _init_group_linear(key, num, din, dout):
    # matches nn.Parameter(...).uniform_(-a, a) with a = 1/sqrt(dout)
    a = 1.0 / math.sqrt(dout)
    kw, kb = jax.random.split(key)
    w = jax.random.uniform(kw, (num, din, dout), jnp.float32, -a, a)
    b = jax.random.uniform(kb, (num, dout), jnp.float32, -a, a)
    return w, b


def _run_case(key, B, num, in_dim, rank, out_dim, compute_dtype, atol, rtol):
    kx, k1, k2 = jax.random.split(key, 3)
    x = jax.random.normal(kx, (B, num, in_dim), jnp.float32)
    w1, b1 = _init_group_linear(k1, num, in_dim, rank)
    w2, b2 = _init_group_linear(k2, num, rank, out_dim)

    out = jax.block_until_ready(
        group_mlp(x, w1, b1, w2, b2, compute_dtype=compute_dtype))
    ref = group_mlp_ref(x, w1, b1, w2, b2)
    assert out.shape == (B, num, out_dim)
    assert out.dtype == x.dtype
    err = float(jnp.max(jnp.abs(out - ref)))
    assert jnp.allclose(out, ref, atol=atol, rtol=rtol), (
        f"mismatch vs reference (max abs err {err:.3e})")


if __name__ == "__main__":
    key = jax.random.PRNGKey(0)
    k_a, k_b, k_c = jax.random.split(key, 3)

    # 1) Module's natural toy sizes, f32 storage path (tight tolerance).
    _run_case(k_a, B=2, num=4, in_dim=16, rank=32, out_dim=16,
              compute_dtype=jnp.float32, atol=1e-4, rtol=1e-4)

    # 2) Lane-aligned packed dims + bf16 storage (HBM-bound fast path).
    _run_case(k_b, B=16, num=4, in_dim=32, rank=16, out_dim=128,
              compute_dtype=jnp.bfloat16, atol=4e-2, rtol=4e-2)

    # 3) Batch padding (B=30 -> 32), larger group packing, bf16.
    _run_case(k_c, B=30, num=8, in_dim=64, rank=32, out_dim=64,
              compute_dtype=jnp.bfloat16, atol=4e-2, rtol=4e-2)

    print("KERNEL_OK")
</pallas_src>

<mosaic_0001>
module attributes {stable_mosaic.version = 11 : i64} {
  func.func @_group_mlp_kernel(%arg0: i32, %arg1: i32, %arg2: memref<8x64xf32, #tpu.memory_space<vmem>>, %arg3: memref<1x64x128xf32, #tpu.memory_space<vmem>>, %arg4: memref<1x1x128xf32, #tpu.memory_space<vmem>>, %arg5: memref<1x128x64xf32, #tpu.memory_space<vmem>>, %arg6: memref<1x1x64xf32, #tpu.memory_space<vmem>>, %arg7: memref<8x64xf32, #tpu.memory_space<vmem>>) attributes {dimension_semantics = [#tpu.dimension_semantics<parallel>, #tpu.dimension_semantics<parallel>], iteration_bounds = array<i64: 1, 1>, scalar_prefetch = 0 : i64, scratch_operands = 0 : i64, tpu.core_type = #tpu.core_type<tc>, window_params = [{transform_indices = @transform_0, window_bounds = array<i64: 8, 64>}, {transform_indices = @transform_1, window_bounds = array<i64: 1, 64, 128>}, {transform_indices = @transform_2, window_bounds = array<i64: 1, 1, 128>}, {transform_indices = @transform_3, window_bounds = array<i64: 1, 128, 64>}, {transform_indices = @transform_4, window_bounds = array<i64: 1, 1, 64>}, {transform_indices = @transform_5, window_bounds = array<i64: 8, 64>}]} {
    %c0 = arith.constant 0 : index
    %c0_0 = arith.constant 0 : index
    %0 = vector.load %arg2[%c0, %c0_0] : memref<8x64xf32, #tpu.memory_space<vmem>>, vector<8x64xf32>
    %c0_1 = arith.constant 0 : index
    %c0_2 = arith.constant 0 : index
    %c0_3 = arith.constant 0 : index
    %1 = vector.load %arg3[%c0_1, %c0_2, %c0_3] : memref<1x64x128xf32, #tpu.memory_space<vmem>>, vector<1x64x128xf32>
    %2 = vector.shape_cast %1 : vector<1x64x128xf32> to vector<64x128xf32>
    %cst = arith.constant dense<0.000000e+00> : vector<8x128xf32>
    %3 = tpu.matmul %0, %2, %cst {dimension_numbers = #tpu.dot_dimension_numbers<[1], [0], [0], [1], [0, 0, 1, 1], [], []>} : vector<8x64xf32>, vector<64x128xf32>, vector<8x128xf32> -> vector<8x128xf32>
    %c0_4 = arith.constant 0 : index
    %c0_5 = arith.constant 0 : index
    %c0_6 = arith.constant 0 : index
    %4 = vector.load %arg4[%c0_4, %c0_5, %c0_6] : memref<1x1x128xf32, #tpu.memory_space<vmem>>, vector<1x1x128xf32>
    %5 = vector.shape_cast %4 : vector<1x1x128xf32> to vector<1x128xf32>
    %6 = vector.broadcast %5 : vector<1x128xf32> to vector<8x128xf32>
    %7 = arith.addf %3, %6 : vector<8x128xf32>
    %cst_7 = arith.constant 0.000000e+00 : f32
    %8 = vector.broadcast %cst_7 : f32 to vector<8x128xf32>
    %9 = arith.maximumf %7, %8 : vector<8x128xf32>
    %c0_8 = arith.constant 0 : index
    %c0_9 = arith.constant 0 : index
    %c0_10 = arith.constant 0 : index
    %10 = vector.load %arg5[%c0_8, %c0_9, %c0_10] : memref<1x128x64xf32, #tpu.memory_space<vmem>>, vector<1x128x64xf32>
    %11 = vector.shape_cast %10 : vector<1x128x64xf32> to vector<128x64xf32>
    %cst_11 = arith.constant dense<0.000000e+00> : vector<8x64xf32>
    %12 = tpu.matmul %9, %11, %cst_11 {dimension_numbers = #tpu.dot_dimension_numbers<[1], [0], [0], [1], [0, 0, 1, 1], [], []>} : vector<8x128xf32>, vector<128x64xf32>, vector<8x64xf32> -> vector<8x64xf32>
    %c0_12 = arith.constant 0 : index
    %c0_13 = arith.constant 0 : index
    %c0_14 = arith.constant 0 : index
    %13 = vector.load %arg6[%c0_12, %c0_13, %c0_14] : memref<1x1x64xf32, #tpu.memory_space<vmem>>, vector<1x1x64xf32>
    %14 = vector.shape_cast %13 : vector<1x1x64xf32> to vector<1x64xf32>
    %15 = vector.broadcast %14 : vector<1x64xf32> to vector<8x64xf32>
    %16 = arith.addf %12, %15 : vector<8x64xf32>
    %c0_15 = arith.constant 0 : index
    %c0_16 = arith.constant 0 : index
    %17 = vector.load %arg7[%c0_15, %c0_16] : memref<8x64xf32, #tpu.memory_space<vmem>>, vector<8x64xf32>
    tpu.vector_store %arg7[%c0_15, %c0_16], %16 {strides = array<i32>} : memref<8x64xf32, #tpu.memory_space<vmem>>, vector<8x64xf32>,
    return
  }
  func.func @transform_0(%arg0: i32, %arg1: i32) -> (i32, i32) {
    %c0_i32 = arith.constant 0 : i32
    return %arg1, %arg0 : i32, i32
  }
  func.func @transform_1(%arg0: i32, %arg1: i32) -> (i32, i32, i32) {
    %c0_i32 = arith.constant 0 : i32
    %c0_i32_0 = arith.constant 0 : i32
    %c0_i32_1 = arith.constant 0 : i32
    return %arg0, %c0_i32, %c0_i32_0 : i32, i32, i32
  }
  func.func @transform_2(%arg0: i32, %arg1: i32) -> (i32, i32, i32) {
    %c0_i32 = arith.constant 0 : i32
    %c0_i32_0 = arith.constant 0 : i32
    %c0_i32_1 = arith.constant 0 : i32
    return %arg0, %c0_i32, %c0_i32_0 : i32, i32, i32
  }
  func.func @transform_3(%arg0: i32, %arg1: i32) -> (i32, i32, i32) {
    %c0_i32 = arith.constant 0 : i32
    %c0_i32_0 = arith.constant 0 : i32
    %c0_i32_1 = arith.constant 0 : i32
    return %arg0, %c0_i32, %c0_i32_0 : i32, i32, i32
  }
  func.func @transform_4(%arg0: i32, %arg1: i32) -> (i32, i32, i32) {
    %c0_i32 = arith.constant 0 : i32
    %c0_i32_0 = arith.constant 0 : i32
    %c0_i32_1 = arith.constant 0 : i32
    return %arg0, %c0_i32, %c0_i32_0 : i32, i32, i32
  }
  func.func @transform_5(%arg0: i32, %arg1: i32) -> (i32, i32) {
    %c0_i32 = arith.constant 0 : i32
    return %arg1, %arg0 : i32, i32
  }
}

</mosaic_0001>

<bundles_post_ra>
// kernel: tpu_custom_call.1
= control target key start
LH: loop header
LB: loop body
LE: loop exit
PB: predicated region body
PF: predicated region fallthrough
CT: control target
= control target key end

     0   :  { %v367_v3 = vmov 0.0|0.0   ;;  %vm368_vm0 = vmmov 0   ;;  %v369_v6 = vmov 0.0   ;;  %s496_s0 = inlined_call_operand.vmem [shape: f32[8,64], index: 0, kind: input, shape index: {}]   ;;  %s497_s1 = inlined_call_operand.vmem [shape: f32[1,64,128], index: 1, kind: input, shape index: {}]   ;;  %s498_s2 = inlined_call_operand.vmem [shape: f32[1,1,128], index: 2, kind: input, shape index: {}]   ;;  %s499_s3 = inlined_call_operand.vmem [shape: f32[1,128,64], index: 3, kind: input, shape index: {}]   ;;  %s500_s4 = inlined_call_operand.vmem [shape: f32[1,1,64], index: 4, kind: input, shape index: {}]   ;;  %s501_s5 = inlined_call_operand.hbm [shape: f32[8,64], index: 5, kind: output, shape index: {}]  }
   0x1   :  { %v22_v0 = vld [vmem:[%s497_s1] sm:$0xff]  ;;  %v23_v1 = vld [vmem:[%s497_s1 + $0x8] sm:$0xff]  ;;  %v24_v2 = vld [vmem:[%s497_s1 + $0x10] sm:$0xff]  ;;  %303 = vmatprep.subr.bf16.mxu0 %v367_v3  ;;  %265 = vmatprep.mubr.msk.f32.mxu0 %vm368_vm0, %v369_v6 }
   0x2   :  { %v304_v4 = vpack.c.bf16 %v23_v1, %v22_v0  ;;  %v25_v5 = vld [vmem:[%s497_s1 + $0x18] sm:$0xff]  ;;  %315 = vmatprep.subr.bf16.mxu1 %v367_v3  ;;  %300 = vmatprep.mubr.msk.f32.mxu1 %vm368_vm0, %v369_v6  ;;  %v112_v8 = vld [vmem:[%s499_s3] sm:$0xff]  ;;  %v113_v9 = vld [vmem:[%s499_s3 + $0x8] sm:$0xff] }
   0x3   :  { %v307_v7 = vpack.c.bf16 %v25_v5, %v24_v2  ;;  %v114_v10 = vld [vmem:[%s499_s3 + $0x10] sm:$0xff]  ;;  %v26_v11 = vld [vmem:[%s497_s1 + $0x20] sm:$0xff]  ;;  %v27_v12 = vld [vmem:[%s497_s1 + $0x28] sm:$0xff]  ;;  %v316_v13 = vpack.c.bf16 %v113_v9, %v112_v8 }
   0x4   :  { %305 = vmatpush3.bf16.msra.mxu0 %v304_v4  ;;  %v115_v14 = vld [vmem:[%s499_s3 + $0x18] sm:$0xff]  ;;  %v310_v16 = vpack.c.bf16 %v27_v12, %v26_v11  ;;  %v116_v17 = vld [vmem:[%s499_s3 + $0x20] sm:$0xff]  ;;  %v117_v18 = vld [vmem:[%s499_s3 + $0x28] sm:$0xff] }
   0x5   :  { %306 = vmatprep.subr.bf16.mxu0 %v367_v3  ;;  %317 = vmatpush3.bf16.msra.mxu1 %v316_v13  ;;  %v319_v15 = vpack.c.bf16 %v115_v14, %v114_v10  ;;  %v28_v19 = vld [vmem:[%s497_s1 + $0x30] sm:$0xff]  ;;  %v29_v20 = vld [vmem:[%s497_s1 + $0x38] sm:$0xff] }
   0x6   :  { %318 = vmatprep.subr.bf16.mxu1 %v367_v3 }
   0x8   :  { %308 = vmatpush3.bf16.msra.mxu0 %v307_v7 }
   0x9   :  { %309 = vmatprep.subr.bf16.mxu0 %v367_v3 }
   0xa   :  { %10 = vsyncpa [#allocation3], 0  ;;  %320 = vmatpush3.bf16.msra.mxu1 %v319_v15  ;;  %v322_v21 = vpack.c.bf16 %v117_v18, %v116_v17  ;;  %v313_v22 = vpack.c.bf16 %v29_v20, %v28_v19  ;;  %v118_v23 = vld [vmem:[%s499_s3 + $0x30] sm:$0xff]  ;;  %v119_v24 = vld [vmem:[%s499_s3 + $0x38] sm:$0xff]  ;;  %vm37_vm1 = vcmask 523264   ;;  %s370_s20 = smov [#allocation2]  }
   0xb   :  { %321 = vmatprep.subr.bf16.mxu1 %v367_v3  ;;  %v325_v25 = vpack.c.bf16 %v119_v24, %v118_v23  ;;  %v21_v26 = vld [vmem:[%s496_s0] sm:$0xff]  ;;  %v121_v28 = vld [vmem:[%s499_s3 + $0x48] sm:$0xff]  ;;  %v122_v30 = vld [vmem:[%s499_s3 + $0x50] sm:$0xff]  ;;  %s212_s21 = sshll.u32 %s370_s20, 4  ;;  %s213_s21 = int_to_ptr.vmem [resolvable:$true] %s212_s21 }
   0xc   :  { %311 = vmatpush3.bf16.msra.mxu0 %v310_v16  ;;  %v120_v27 = vld [vmem:[%s499_s3 + $0x40] sm:$0xff]  ;;  %v123_v31 = vld [vmem:[%s499_s3 + $0x58] sm:$0xff]  ;;  %v125_v34 = vld [vmem:[%s499_s3 + $0x68] sm:$0xff]  ;;  %p348_p1 = scmp.lt.s32.totalorder %s213_s21, %s213_s21 }
   0xd   :  { %312 = vmatprep.subr.bf16.mxu0 %v367_v3  ;;  %v328_v29 = vpack.c.bf16 %v121_v28, %v120_v27  ;;  %v331_v32 = vpack.c.bf16 %v123_v31, %v122_v30  ;;  %v124_v33 = vld [vmem:[%s499_s3 + $0x60] sm:$0xff]  ;;  %v126_v36 = vld [vmem:[%s499_s3 + $0x70] sm:$0xff]  ;;  %v127_v37 = vld [vmem:[%s499_s3 + $0x78] sm:$0xff]  ;;  %s343_s3 = scalar_lea.vmem %s213_s21, 128 }
   0xe   :  { %323 = vmatpush3.bf16.msra.mxu1 %v322_v21  ;;  %v334_v35 = vpack.c.bf16 %v125_v34, %v124_v33  ;;  %v337_v38 = vpack.c.bf16 %v127_v37, %v126_v36  ;;  %v220_v39 = vld [vmem:[%s498_s2] ss:$0 sm:$0xff]  ;;  %p344_p0 = scmp.ne.s32.totalorder %s213_s21, %s343_s3  ;;  %p349_p2 = scmp.lt.s32.totalorder %s343_s3, %s343_s3 }
   0xf   :  { %324 = vmatprep.subr.bf16.mxu1 %v367_v3  ;;  %v222_v44 = vld [vmem:[%s500_s4] ss:$0 sm:$0xff] }
  0x10   :  { %314 = vmatpush3.bf16.msra.mxu0 %v313_v22  ;;  %p350_p3 = por %p349_p2, %p348_p1 }
  0x12   :  { %326 = vmatpush3.bf16.msra.mxu1 %v325_v25  ;;  %p351_p4 = pnand %p350_p3, %p344_p0 }
  0x13   :  { %266 = vmatmul.mubr.msk.f32.vlgmr.msra.gmra.mrb[0].mxu0 %vm37_vm1, %v21_v26  ;;  %327 = vmatprep.subr.bf16.mxu1 %v367_v3 }
  0x16   :  { %329 = vmatpush3.bf16.msra.mxu1 %v328_v29 }
  0x17   :  { %330 = vmatprep.subr.bf16.mxu1 %v367_v3 }
  0x1a   :  { %332 = vmatpush3.bf16.msra.mxu1 %v331_v32 }
  0x1b   :  { %333 = vmatprep.subr.bf16.mxu1 %v367_v3 }
  0x1e   :  { %335 = vmatpush3.bf16.msra.mxu1 %v334_v35 }
  0x1f   :  { %336 = vmatprep.subr.bf16.mxu1 %v367_v3 }
  0x22   :  { %338 = vmatpush3.bf16.msra.mxu1 %v337_v38 }
  0xe6   :  { %v107_v40 = vpop.f32.mrb[0].mxu0 }
  0xe7   :  { %v108_v41 = vadd.f32 %v220_v39, %v107_v40  ;;  %v267_v42 = vpop.f32.mrb[1].mxu0 }
  0xe9   :  { %v111_v43 = vmax.f32 %v108_v41, 0.0 }
  0xeb   :  { %301 = vmatmul.mubr.f32.vlgmr.msra.gmra.mrb[0].mxu1 %v111_v43 }
 0x1be   :  { %v201_v45 = vpop.f32.mrb[0].mxu1 }
 0x1bf   :  { %v202_v46 = vadd.f32 %v222_v44, %v201_v45  ;;  %v302_v47 = vpop.f32.mrb[1].mxu1 }
 0x1c1   :  { %205 = vst.msk [vmem:[#allocation2] sm:$0xff] %vm37_vm1, %v202_v46 }
 0x1c2   :  { %354 = shalt.err (!%p351_p4)
}
 0x1c3   :  { %s355_s23 = scalar_lea.hbm %s501_s5, 128 }
 0x1c4   :  { %p356_p5 = scmp.ne.s32.totalorder %s501_s5, %s355_s23  ;;  %p359_p6 = scmp.lt.u32.totalorder %s355_s23, %s501_s5 }
 0x1c6   :  { %p361_p7 = pnand %p359_p6, %p356_p5 }
 0x1c8   :  { %364 = shalt.err (!%p361_p7)
}
 0x1c9   :  { %215 = dma.vmem_to_hbm [thread:$0]  %s213_s21, 128, %s501_s5, [#allocation3]  }
 0x1ca   :  { %365 = dma.done.wait [#allocation3], 128  }
 0x1cb   :  { %366 = vsyncadd [#allocation3], 4294967168 }
 0x1cc   :  { %219 = vsyncpa [#allocation3], 1 }

</bundles_post_ra>
